<compile_context>
chip_gen: v7x
topology: tpu7x:2x2x1
jax: 0.10.0
libtpu: 0.0.40
codegen_flags: <defaults>
</compile_context>

<pallas_src>
import jax
import jax.numpy as jnp
from jax import lax
from jax.experimental import pallas as pl
from jax.experimental.pallas import tpu as pltpu


# ---------------------------------------------------------------------------
# Generation-aware VMEM budgeting (v7x: 64 MiB/TC, v5e/v6e: 128 MiB).
# ---------------------------------------------------------------------------
def _vmem_budget():
    cap = 64 * 1024 * 1024  # conservative default = v7x per-core VMEM
    try:
        info = pltpu.get_tpu_info()
        cap_attr = getattr(info, "vmem_capacity_bytes", None)
        if cap_attr:
            cap = int(cap_attr)
    except Exception:
        pass
    # 32 MiB scoped limit on v7x, 64 MiB on v5e/v6e.
    vmem_limit = min(cap // 2, 64 * 1024 * 1024)
    resident_budget = int(vmem_limit * 0.8)  # headroom for compiler temporaries
    return vmem_limit, resident_budget


def _apply_footprint(n_blk, lane_blk, C):
    """Conservative resident bytes for the apply pass (f32 accounting):
    2 buffers for the x input block, 2 for the output block, plus the
    resident lane-expanded scale/shift blocks (counted twice for safety)."""
    esz = 4
    x_blk = n_blk * C * lane_blk * esz
    scsh = 2 * C * lane_blk * esz
    return 4 * x_blk + 2 * scsh


def _pick_tiles(N, C, L, budget):
    """Returns (n_blk, lane_blk, lane_tiles, ragged) for the streaming path."""
    esz = 4
    row_bytes = C * L * esz
    target_x = min(8 * 1024 * 1024, max(budget // 4, 256 * 1024))  # 4-8 MiB blocks

    # Preferred: full contiguous (C, L) rows per batch element, tile only N.
    if _apply_footprint(1, L, C) <= budget:
        n_max = 1
        for n in range(2, N + 1):
            if (_apply_footprint(n, L, C) <= budget
                    and n * row_bytes <= max(target_x, row_bytes)):
                n_max = n
        n_blk = max(d for d in range(1, n_max + 1) if N % d == 0)
        return n_blk, L, 1, False

    # A single row is too big: tile the lane dim.  Lane blocks are multiples
    # of 256 (128-aligned AND whole real/imag pairs so every tile starts at an
    # even global offset); batch block is 1.
    lane_cap = budget // _apply_footprint(1, 1, C)          # budget constraint
    lane_cap = min(lane_cap, max(target_x // (C * esz), 256))
    lane_cap = max(256, (lane_cap // 256) * 256)

    lane_blk = 0
    t = 256
    while t <= lane_cap:
        if L % t == 0:
            lane_blk = t
        t += 256
    if lane_blk == 0:
        lane_blk = lane_cap
    ragged = (L % lane_blk) != 0
    lane_tiles = (L + lane_blk - 1) // lane_blk
    return 1, lane_blk, lane_tiles, ragged


# ---------------------------------------------------------------------------
# Kernels
# ---------------------------------------------------------------------------
def _make_fused_kernel(eps, inv_cnt):
    """Single-pass: stats + normalization with x fully resident in VMEM."""

    def kernel(x_ref, gamma_ref, beta_ref, o_ref):
        x = x_ref[...].astype(jnp.float32)          # (N, C, L)
        C, L = x.shape[1], x.shape[2]
        xs = jnp.sum(x, axis=0)                     # (C, L)
        xxs = jnp.sum(x * x, axis=0)

        lane = lax.broadcasted_iota(jnp.int32, (1, L), 1)
        even = (lane % 2) == 0                      # real parts on even lanes
        s_e = jnp.sum(jnp.where(even, xs, 0.0), axis=1, keepdims=True)   # (C,1)
        s_a = jnp.sum(xs, axis=1, keepdims=True)
        q_e = jnp.sum(jnp.where(even, xxs, 0.0), axis=1, keepdims=True)
        q_a = jnp.sum(xxs, axis=1, keepdims=True)

        col = lax.broadcasted_iota(jnp.int32, (C, 2), 1)
        s = jnp.where(col == 0, s_e, s_a - s_e)     # (C, 2)
        q = jnp.where(col == 0, q_e, q_a - q_e)

        mean = s * inv_cnt
        var = jnp.maximum(q * inv_cnt - mean * mean, 0.0)   # biased variance
        scale = gamma_ref[...] * lax.rsqrt(var + eps)        # (C, 2)
        shift = beta_ref[...] - mean * scale

        even_cl = (lax.broadcasted_iota(jnp.int32, (C, L), 1) % 2) == 0
        sc = jnp.where(even_cl, scale[:, 0:1], scale[:, 1:2])   # (C, L)
        sh = jnp.where(even_cl, shift[:, 0:1], shift[:, 1:2])
        o_ref[...] = (x * sc[None] + sh[None]).astype(o_ref.dtype)

    return kernel


def _make_stats_kernel(L, lane_blk, ragged):
    """Per-block partial per-channel/per-part sum and sum-of-squares.
    Each grid step writes its own (1,1,C,2) output block exactly once."""

    def kernel(x_ref, sum_ref, sq_ref):
        x = x_ref[...].astype(jnp.float32)          # (n_blk, C, Lb)
        xs = jnp.sum(x, axis=0)                     # (C, Lb)
        xxs = jnp.sum(x * x, axis=0)
        C, Lb = xs.shape

        lane = lax.broadcasted_iota(jnp.int32, (1, Lb), 1)
        if ragged:
            valid = (pl.program_id(1) * lane_blk + lane) < L
            xs = jnp.where(valid, xs, 0.0)
            xxs = jnp.where(valid, xxs, 0.0)

        even = (lane % 2) == 0                      # real parts on even lanes
        s_e = jnp.sum(jnp.where(even, xs, 0.0), axis=1, keepdims=True)   # (C,1)
        s_a = jnp.sum(xs, axis=1, keepdims=True)
        q_e = jnp.sum(jnp.where(even, xxs, 0.0), axis=1, keepdims=True)
        q_a = jnp.sum(xxs, axis=1, keepdims=True)

        col = lax.broadcasted_iota(jnp.int32, (C, 2), 1)
        sum_ref[0, 0] = jnp.where(col == 0, s_e, s_a - s_e)
        sq_ref[0, 0] = jnp.where(col == 0, q_e, q_a - q_e)

    return kernel


def _apply_kernel(x_ref, sc_ref, sh_ref, o_ref):
    # x_ref/o_ref: (n_blk, C, Lb); sc_ref/sh_ref: (C, Lb) lane-expanded.
    x = x_ref[...].astype(jnp.float32)
    o_ref[...] = (x * sc_ref[...][None] + sh_ref[...][None]).astype(o_ref.dtype)


# ---------------------------------------------------------------------------
# Streaming two-pass forward
# ---------------------------------------------------------------------------
def _two_pass_forward(x3, gamma2, beta2, eps, vmem_limit, budget):
    N, C, L = x3.shape
    n_blk, lane_blk, lane_tiles, ragged = _pick_tiles(N, C, L, budget)
    n_tiles = N // n_blk

    stats_kernel = _make_stats_kernel(L, lane_blk, ragged)
    part_sum, part_sq = pl.pallas_call(
        stats_kernel,
        out_shape=(
            jax.ShapeDtypeStruct((n_tiles, lane_tiles, C, 2), jnp.float32),
            jax.ShapeDtypeStruct((n_tiles, lane_tiles, C, 2), jnp.float32),
        ),
        grid_spec=pltpu.PrefetchScalarGridSpec(
            num_scalar_prefetch=0,
            grid=(n_tiles, lane_tiles),
            in_specs=[
                pl.BlockSpec((n_blk, C, lane_blk), lambda i, j: (i, 0, j)),
            ],
            out_specs=(
                pl.BlockSpec((1, 1, C, 2), lambda i, j: (i, j, 0, 0)),
                pl.BlockSpec((1, 1, C, 2), lambda i, j: (i, j, 0, 0)),
            ),
        ),
        compiler_params=pltpu.CompilerParams(
            dimension_semantics=("parallel", "parallel"),
            vmem_limit_bytes=vmem_limit,
        ),
    )(x3)

    # Tiny finalize in plain JAX (n_tiles*lane_tiles*C*2 elements).
    cnt = jnp.float32(N * (L // 2))
    s = jnp.sum(part_sum, axis=(0, 1))                 # (C, 2)
    q = jnp.sum(part_sq, axis=(0, 1))
    mean = s / cnt
    # TODO(synk): one-pass E[x^2]-mean^2 in f32 is cancellation-prone when
    # |mean| >> std; a centered second pass would cost an extra read of x.
    var = jnp.maximum(q / cnt - mean * mean, 0.0)       # biased variance
    scale = gamma2 * lax.rsqrt(var + eps)                # (C, 2)
    shift = beta2 - mean * scale

    # Lane-expanded scale/shift (period-2 pattern; every lane tile starts at
    # an even global offset, so one (C, lane_blk) slab serves every tile).
    sc = jnp.tile(scale, (1, lane_blk // 2))             # (C, lane_blk)
    sh = jnp.tile(shift, (1, lane_blk // 2))

    out3 = pl.pallas_call(
        _apply_kernel,
        out_shape=jax.ShapeDtypeStruct((N, C, L), x3.dtype),
        grid_spec=pltpu.PrefetchScalarGridSpec(
            num_scalar_prefetch=0,
            grid=(n_tiles, lane_tiles),
            in_specs=[
                pl.BlockSpec((n_blk, C, lane_blk), lambda i, j: (i, 0, j)),
                pl.BlockSpec((C, lane_blk), lambda i, j: (0, 0)),
                pl.BlockSpec((C, lane_blk), lambda i, j: (0, 0)),
            ],
            out_specs=pl.BlockSpec((n_blk, C, lane_blk), lambda i, j: (i, 0, j)),
        ),
        compiler_params=pltpu.CompilerParams(
            dimension_semantics=("parallel", "parallel"),
            vmem_limit_bytes=vmem_limit,
        ),
    )(x3, sc, sh)
    return out3


# ---------------------------------------------------------------------------
# Public entry point
# ---------------------------------------------------------------------------
def complex_batch_norm_2d(x, gamma_re, beta_re, gamma_im, beta_im, *,
                          eps=1e-5, force_two_pass=False,
                          block_budget_bytes=None):
    """x: (N, C, H, W, 2).  Training-mode forward of ComplexBatchNorm2d."""
    N, C, H, W, two = x.shape
    assert two == 2
    L = H * W * 2                       # real/imag interleaved on the lane axis
    x3 = x.reshape(N, C, L)             # free reshape (contiguous), no transpose

    vmem_limit, resident_budget = _vmem_budget()
    budget = resident_budget
    if block_budget_bytes is not None:
        budget = min(budget, int(block_budget_bytes))

    gamma2 = jnp.stack([gamma_re, gamma_im], axis=1).astype(jnp.float32)  # (C,2)
    beta2 = jnp.stack([beta_re, beta_im], axis=1).astype(jnp.float32)     # (C,2)

    # Fused single-pass path when x (+ f32 working set) fits in VMEM.
    fused_bytes = (2 * N + 6) * C * L * 4
    if (not force_two_pass) and fused_bytes <= budget:
        kern = _make_fused_kernel(float(eps), 1.0 / float(N * H * W))
        out3 = pl.pallas_call(
            kern,
            out_shape=jax.ShapeDtypeStruct((N, C, L), x.dtype),
            compiler_params=pltpu.CompilerParams(vmem_limit_bytes=vmem_limit),
        )(x3, gamma2, beta2)
    else:
        out3 = _two_pass_forward(x3, gamma2, beta2, float(eps),
                                 vmem_limit, budget)

    return out3.reshape(N, C, H, W, 2)


# ---------------------------------------------------------------------------
# Pure-JAX reference
# ---------------------------------------------------------------------------
def _reference(x, gamma_re, beta_re, gamma_im, beta_im, eps=1e-5):
    def bn(xi, g, b):
        mean = jnp.mean(xi, axis=(0, 2, 3), keepdims=True)
        var = jnp.mean((xi - mean) ** 2, axis=(0, 2, 3), keepdims=True)
        return (xi - mean) * lax.rsqrt(var + eps) * g[None, :, None, None] \
            + b[None, :, None, None]

    real = bn(x[..., 0], gamma_re, beta_re)
    imag = bn(x[..., 1], gamma_im, beta_im)
    return jnp.stack((real, imag), axis=-1)


if __name__ == "__main__":
    base_key = jax.random.PRNGKey(0)

    def run_case(N, C, H, W, case, **kwargs):
        keys = jax.random.split(jax.random.fold_in(base_key, case), 5)
        x = jax.random.normal(keys[0], (N, C, H, W, 2), dtype=jnp.float32)
        gamma_re = 1.0 + 0.1 * jax.random.normal(keys[1], (C,), dtype=jnp.float32)
        beta_re = 0.1 * jax.random.normal(keys[2], (C,), dtype=jnp.float32)
        gamma_im = 1.0 + 0.1 * jax.random.normal(keys[3], (C,), dtype=jnp.float32)
        beta_im = 0.1 * jax.random.normal(keys[4], (C,), dtype=jnp.float32)

        out = complex_batch_norm_2d(x, gamma_re, beta_re, gamma_im, beta_im,
                                    eps=1e-5, **kwargs)
        out = jax.block_until_ready(out)
        ref = _reference(x, gamma_re, beta_re, gamma_im, beta_im, eps=1e-5)
        assert out.shape == (N, C, H, W, 2), out.shape
        err = float(jnp.max(jnp.abs(out - ref)))
        assert jnp.allclose(out, ref, atol=1e-4, rtol=1e-4), err

    # 1) Fused single-pass path (whole activation resident in VMEM).
    run_case(2, 4, 16, 16, case=0)
    # 2) Streaming two-pass path with full contiguous rows, tiled over batch.
    run_case(4, 8, 16, 16, case=1, force_two_pass=True)
    # 3) Streaming two-pass path with lane tiling and a ragged (masked) tail.
    run_case(2, 8, 10, 13, case=2, force_two_pass=True,
             block_budget_bytes=64 * 1024)

    print("KERNEL_OK")
</pallas_src>

<mosaic_0001>
module attributes {stable_mosaic.version = 11 : i64} {
  func.func @kernel(%arg0: memref<2x4x512xf32, #tpu.memory_space<vmem>>, %arg1: memref<4x2xf32, #tpu.memory_space<vmem>>, %arg2: memref<4x2xf32, #tpu.memory_space<vmem>>, %arg3: memref<2x4x512xf32, #tpu.memory_space<vmem>>) attributes {dimension_semantics = [], scalar_prefetch = 0 : i64, scratch_operands = 0 : i64, tpu.core_type = #tpu.core_type<tc>} {
    %c0 = arith.constant 0 : index
    %c0_0 = arith.constant 0 : index
    %c0_1 = arith.constant 0 : index
    %0 = vector.load %arg0[%c0, %c0_0, %c0_1] : memref<2x4x512xf32, #tpu.memory_space<vmem>>, vector<2x4x512xf32>
    %cst = arith.constant dense<0.000000e+00> : vector<4x512xf32>
    %1 = vector.multi_reduction <add>, %0, %cst [0] : vector<2x4x512xf32> to vector<4x512xf32>
    %2 = arith.mulf %0, %0 : vector<2x4x512xf32>
    %cst_2 = arith.constant dense<0.000000e+00> : vector<4x512xf32>
    %3 = vector.multi_reduction <add>, %2, %cst_2 [0] : vector<2x4x512xf32> to vector<4x512xf32>
    %4 = tpu.iota {dimensions = array<i32: 1>} : vector<1x512xi32>
    %c2_i32 = arith.constant 2 : i32
    %c0_i32 = arith.constant 0 : i32
    %5 = arith.cmpi eq, %c2_i32, %c0_i32 : i32
    %c1_i32 = arith.constant 1 : i32
    %6 = arith.select %5, %c1_i32, %c2_i32 : i32
    %7 = vector.broadcast %6 : i32 to vector<1x512xi32>
    %8 = arith.remsi %4, %7 : vector<1x512xi32>
    %c0_i32_3 = arith.constant 0 : i32
    %9 = vector.broadcast %c0_i32_3 : i32 to vector<1x512xi32>
    %10 = arith.cmpi ne, %8, %9 : vector<1x512xi32>
    %c0_i32_4 = arith.constant 0 : i32
    %11 = vector.broadcast %c0_i32_4 : i32 to vector<1x512xi32>
    %12 = arith.cmpi slt, %8, %11 : vector<1x512xi32>
    %c0_i32_5 = arith.constant 0 : i32
    %13 = arith.cmpi slt, %6, %c0_i32_5 : i32
    %14 = vector.broadcast %13 : i1 to vector<1x512xi1>
    %15 = vector.broadcast %14 : vector<1x512xi1> to vector<1x512xi1>
    %16 = arith.xori %12, %15 : vector<1x512xi1>
    %17 = arith.andi %16, %10 : vector<1x512xi1>
    %18 = vector.broadcast %6 : i32 to vector<1x512xi32>
    %19 = arith.addi %8, %18 : vector<1x512xi32>
    %20 = arith.select %17, %19, %8 : vector<1x512xi1>, vector<1x512xi32>
    %c0_i32_6 = arith.constant 0 : i32
    %21 = vector.broadcast %c0_i32_6 : i32 to vector<1x512xi32>
    %22 = arith.cmpi eq, %20, %21 : vector<1x512xi32>
    %cst_7 = arith.constant 0.000000e+00 : f32
    %23 = vector.shape_cast %22 : vector<1x512xi1> to vector<1x512xi1>
    %24 = vector.broadcast %23 : vector<1x512xi1> to vector<4x512xi1>
    %25 = vector.broadcast %cst_7 : f32 to vector<4x512xf32>
    %26 = arith.select %24, %1, %25 : vector<4x512xi1>, vector<4x512xf32>
    %cst_8 = arith.constant dense<0.000000e+00> : vector<4xf32>
    %27 = vector.multi_reduction <add>, %26, %cst_8 [1] : vector<4x512xf32> to vector<4xf32>
    %28 = vector.shape_cast %27 : vector<4xf32> to vector<4x1xf32>
    %cst_9 = arith.constant dense<0.000000e+00> : vector<4xf32>
    %29 = vector.multi_reduction <add>, %1, %cst_9 [1] : vector<4x512xf32> to vector<4xf32>
    %30 = vector.shape_cast %29 : vector<4xf32> to vector<4x1xf32>
    %cst_10 = arith.constant 0.000000e+00 : f32
    %31 = vector.shape_cast %22 : vector<1x512xi1> to vector<1x512xi1>
    %32 = vector.broadcast %31 : vector<1x512xi1> to vector<4x512xi1>
    %33 = vector.broadcast %cst_10 : f32 to vector<4x512xf32>
    %34 = arith.select %32, %3, %33 : vector<4x512xi1>, vector<4x512xf32>
    %cst_11 = arith.constant dense<0.000000e+00> : vector<4xf32>
    %35 = vector.multi_reduction <add>, %34, %cst_11 [1] : vector<4x512xf32> to vector<4xf32>
    %36 = vector.shape_cast %35 : vector<4xf32> to vector<4x1xf32>
    %cst_12 = arith.constant dense<0.000000e+00> : vector<4xf32>
    %37 = vector.multi_reduction <add>, %3, %cst_12 [1] : vector<4x512xf32> to vector<4xf32>
    %38 = vector.shape_cast %37 : vector<4xf32> to vector<4x1xf32>
    %39 = tpu.iota {dimensions = array<i32: 1>} : vector<4x2xi32>
    %c0_i32_13 = arith.constant 0 : i32
    %40 = vector.broadcast %c0_i32_13 : i32 to vector<4x2xi32>
    %41 = arith.cmpi eq, %39, %40 : vector<4x2xi32>
    %42 = arith.subf %30, %28 : vector<4x1xf32>
    %43 = vector.shape_cast %28 : vector<4x1xf32> to vector<4x1xf32>
    %44 = vector.broadcast %43 : vector<4x1xf32> to vector<4x2xf32>
    %45 = vector.shape_cast %42 : vector<4x1xf32> to vector<4x1xf32>
    %46 = vector.broadcast %45 : vector<4x1xf32> to vector<4x2xf32>
    %47 = arith.select %41, %44, %46 : vector<4x2xi1>, vector<4x2xf32>
    %c0_i32_14 = arith.constant 0 : i32
    %48 = vector.broadcast %c0_i32_14 : i32 to vector<4x2xi32>
    %49 = arith.cmpi eq, %39, %48 : vector<4x2xi32>
    %50 = arith.subf %38, %36 : vector<4x1xf32>
    %51 = vector.shape_cast %36 : vector<4x1xf32> to vector<4x1xf32>
    %52 = vector.broadcast %51 : vector<4x1xf32> to vector<4x2xf32>
    %53 = vector.shape_cast %50 : vector<4x1xf32> to vector<4x1xf32>
    %54 = vector.broadcast %53 : vector<4x1xf32> to vector<4x2xf32>
    %55 = arith.select %49, %52, %54 : vector<4x2xi1>, vector<4x2xf32>
    %cst_15 = arith.constant 0.001953125 : f32
    %56 = vector.broadcast %cst_15 : f32 to vector<4x2xf32>
    %57 = arith.mulf %47, %56 : vector<4x2xf32>
    %cst_16 = arith.constant 0.001953125 : f32
    %58 = vector.broadcast %cst_16 : f32 to vector<4x2xf32>
    %59 = arith.mulf %55, %58 : vector<4x2xf32>
    %60 = arith.mulf %57, %57 : vector<4x2xf32>
    %61 = arith.subf %59, %60 : vector<4x2xf32>
    %cst_17 = arith.constant 0.000000e+00 : f32
    %62 = vector.broadcast %cst_17 : f32 to vector<4x2xf32>
    %63 = arith.maximumf %61, %62 : vector<4x2xf32>
    %c0_18 = arith.constant 0 : index
    %c0_19 = arith.constant 0 : index
    %64 = vector.load %arg1[%c0_18, %c0_19] : memref<4x2xf32, #tpu.memory_space<vmem>>, vector<4x2xf32>
    %cst_20 = arith.constant 9.99999974E-6 : f32
    %65 = vector.broadcast %cst_20 : f32 to vector<4x2xf32>
    %66 = arith.addf %63, %65 : vector<4x2xf32>
    %67 = math.rsqrt %66 : vector<4x2xf32>
    %68 = arith.mulf %64, %67 : vector<4x2xf32>
    %c0_21 = arith.constant 0 : index
    %c0_22 = arith.constant 0 : index
    %69 = vector.load %arg2[%c0_21, %c0_22] : memref<4x2xf32, #tpu.memory_space<vmem>>, vector<4x2xf32>
    %70 = arith.mulf %57, %68 : vector<4x2xf32>
    %71 = arith.subf %69, %70 : vector<4x2xf32>
    %72 = tpu.iota {dimensions = array<i32: 1>} : vector<4x512xi32>
    %c2_i32_23 = arith.constant 2 : i32
    %c0_i32_24 = arith.constant 0 : i32
    %73 = arith.cmpi eq, %c2_i32_23, %c0_i32_24 : i32
    %c1_i32_25 = arith.constant 1 : i32
    %74 = arith.select %73, %c1_i32_25, %c2_i32_23 : i32
    %75 = vector.broadcast %74 : i32 to vector<4x512xi32>
    %76 = arith.remsi %72, %75 : vector<4x512xi32>
    %c0_i32_26 = arith.constant 0 : i32
    %77 = vector.broadcast %c0_i32_26 : i32 to vector<4x512xi32>
    %78 = arith.cmpi ne, %76, %77 : vector<4x512xi32>
    %c0_i32_27 = arith.constant 0 : i32
    %79 = vector.broadcast %c0_i32_27 : i32 to vector<4x512xi32>
    %80 = arith.cmpi slt, %76, %79 : vector<4x512xi32>
    %c0_i32_28 = arith.constant 0 : i32
    %81 = arith.cmpi slt, %74, %c0_i32_28 : i32
    %82 = vector.broadcast %81 : i1 to vector<4x512xi1>
    %83 = vector.broadcast %82 : vector<4x512xi1> to vector<4x512xi1>
    %84 = arith.xori %80, %83 : vector<4x512xi1>
    %85 = arith.andi %84, %78 : vector<4x512xi1>
    %86 = vector.broadcast %74 : i32 to vector<4x512xi32>
    %87 = arith.addi %76, %86 : vector<4x512xi32>
    %88 = arith.select %85, %87, %76 : vector<4x512xi1>, vector<4x512xi32>
    %c0_i32_29 = arith.constant 0 : i32
    %89 = vector.broadcast %c0_i32_29 : i32 to vector<4x512xi32>
    %90 = arith.cmpi eq, %88, %89 : vector<4x512xi32>
    %91 = vector.extract_strided_slice %68 {offsets = [0, 0], sizes = [4, 1], strides = [1, 1]} : vector<4x2xf32> to vector<4x1xf32>
    %92 = vector.extract_strided_slice %68 {offsets = [0, 1], sizes = [4, 1], strides = [1, 1]} : vector<4x2xf32> to vector<4x1xf32>
    %93 = vector.shape_cast %91 : vector<4x1xf32> to vector<4x1xf32>
    %94 = vector.broadcast %93 : vector<4x1xf32> to vector<4x512xf32>
    %95 = vector.shape_cast %92 : vector<4x1xf32> to vector<4x1xf32>
    %96 = vector.broadcast %95 : vector<4x1xf32> to vector<4x512xf32>
    %97 = arith.select %90, %94, %96 : vector<4x512xi1>, vector<4x512xf32>
    %98 = vector.extract_strided_slice %71 {offsets = [0, 0], sizes = [4, 1], strides = [1, 1]} : vector<4x2xf32> to vector<4x1xf32>
    %99 = vector.extract_strided_slice %71 {offsets = [0, 1], sizes = [4, 1], strides = [1, 1]} : vector<4x2xf32> to vector<4x1xf32>
    %100 = vector.shape_cast %98 : vector<4x1xf32> to vector<4x1xf32>
    %101 = vector.broadcast %100 : vector<4x1xf32> to vector<4x512xf32>
    %102 = vector.shape_cast %99 : vector<4x1xf32> to vector<4x1xf32>
    %103 = vector.broadcast %102 : vector<4x1xf32> to vector<4x512xf32>
    %104 = arith.select %90, %101, %103 : vector<4x512xi1>, vector<4x512xf32>
    %105 = vector.shape_cast %97 : vector<4x512xf32> to vector<1x4x512xf32>
    %106 = vector.broadcast %105 : vector<1x4x512xf32> to vector<2x4x512xf32>
    %107 = arith.mulf %0, %106 : vector<2x4x512xf32>
    %108 = vector.shape_cast %104 : vector<4x512xf32> to vector<1x4x512xf32>
    %109 = vector.broadcast %108 : vector<1x4x512xf32> to vector<2x4x512xf32>
    %110 = arith.addf %107, %109 : vector<2x4x512xf32>
    %c0_30 = arith.constant 0 : index
    %c0_31 = arith.constant 0 : index
    %c0_32 = arith.constant 0 : index
    %111 = vector.load %arg3[%c0_30, %c0_31, %c0_32] : memref<2x4x512xf32, #tpu.memory_space<vmem>>, vector<2x4x512xf32>
    tpu.vector_store %arg3[%c0_30, %c0_31, %c0_32], %110 {strides = array<i32>} : memref<2x4x512xf32, #tpu.memory_space<vmem>>, vector<2x4x512xf32>,
    return
  }
}

</mosaic_0001>

<bundles_post_ra>
// kernel: tpu_custom_call.1
= control target key start
LH: loop header
LB: loop body
LE: loop exit
PB: predicated region body
PF: predicated region fallthrough
CT: control target
= control target key end

     0   :  { %8 = vsyncpa [#allocation3], 0  ;;  %s529_s0 = inlined_call_operand.hbm [shape: f32[2,4,512], index: 0, kind: input, shape index: {}]   ;;  %s530_s1 = inlined_call_operand.vmem [shape: f32[4,2], index: 1, kind: input, shape index: {}]   ;;  %s531_s2 = inlined_call_operand.vmem [shape: f32[4,2], index: 2, kind: input, shape index: {}]   ;;  %s532_s3 = inlined_call_operand.hbm [shape: f32[2,4,512], index: 3, kind: output, shape index: {}]  }
   0x1   :  { %9 = vsyncpa [#allocation4], 0  ;;  %s348_s12 = smov [#allocation2]   ;;  %s300_s16 = scalar_lea.hbm %s529_s0, 512 }
   0x2   :  { %s15_s13 = sshll.u32 %s348_s12, 4  ;;  %p301_p0 = scmp.ne.s32.totalorder %s529_s0, %s300_s16  ;;  %s16_s13 = int_to_ptr.vmem [resolvable:$true] %s15_s13 }
   0x3   :  { %p304_p1 = scmp.lt.u32.totalorder %s300_s16, %s529_s0 }
   0x5   :  { %p306_p2 = pnand %p304_p1, %p301_p0 }
   0x7   :  { %309 = shalt.err (!%p306_p2)
}
   0x8   :  { %s310_s21 = scalar_lea.vmem %s16_s13, 512  ;;  %p315_p4 = scmp.lt.s32.totalorder %s16_s13, %s16_s13 }
   0x9   :  { %p311_p3 = scmp.ne.s32.totalorder %s16_s13, %s310_s21  ;;  %p316_p5 = scmp.lt.s32.totalorder %s310_s21, %s310_s21 }
   0xb   :  { %p317_p6 = por %p316_p5, %p315_p4 }
   0xd   :  { %p318_p7 = pnand %p317_p6, %p311_p3 }
   0xf   :  { %321 = shalt.err (!%p318_p7)
}
  0x10   :  { %s349_s22 = smov 256   ;;  %s350_s23 = smov 16  }
  0x11   :  { %21 = dma.hbm_to_vmem [thread:$0]  %s529_s0, 512, %s16_s13, [#allocation3], %s349_s22, %s349_s22, %s350_s23  }
  0x12   :  { %344 = dma.done.wait [#allocation3], 512  }
  0x13   :  { %345 = vsyncadd [#allocation3], 4294966784  ;;  %v86_v0 = vlaneseq  ;;  %vm45_vm0 = vcmask 1043456   ;;  %v395_v7 = vld [vmem:[#allocation2] sm:$0xff]  ;;  %v397_v8 = vld [vmem:[#allocation2 + $0x8] sm:$0xff] }
  0x14   :  { %v399_v9 = vld [vmem:[#allocation2 + $0x10] sm:$0xff]  ;;  %v405_v13 = vld [vmem:[#allocation2 + $0x18] sm:$0xff]  ;;  %v37_v14 = vcombine.high %v395_v7, %v395_v7  ;;  %v38_v15 = vcombine.high %v397_v8, %v397_v8  ;;  %v46_v17 = vsel %vm45_vm0, %v395_v7, 0.0  ;;  %v52_v20 = vsel %vm45_vm0, %v397_v8, 0.0 }
  0x15   :  { %v389_v1 = vand.u32 127, %v86_v0  ;;  %v39_v16 = vcombine.high %v399_v9, %v399_v9  ;;  %v40_v18 = vcombine.high %v405_v13, %v405_v13  ;;  %v47_v19 = vsel %vm45_vm0, %v399_v9, 0.0 }
  0x16   :  { %v53_v21 = vsel %vm45_vm0, %v405_v13, 0.0  ;;  %v48_v22 = vadd.f32 %v47_v19, %v46_v17  ;;  %v49_v23 = vsel %vm45_vm0, %v37_v14, 0.0  ;;  %v55_v27 = vsel %vm45_vm0, %v38_v15, 0.0 }
  0x17   :  { %v88_v2 = vadd.s32 128, %v389_v1  ;;  %v89_v3 = vadd.s32 256, %v389_v1  ;;  %v90_v4 = vadd.s32 384, %v389_v1  ;;  %v95_v5 = vand.u32 1, %v389_v1 }
  0x18   :  { %v50_v24 = vsel %vm45_vm0, %v39_v16, 0.0  ;;  %v54_v25 = vadd.f32 %v53_v21, %v52_v20  ;;  %v56_v28 = vsel %vm45_vm0, %v40_v18, 0.0  ;;  %v58_v37 = vmul.f32 %v395_v7, %v395_v7 }
  0x19   :  { %v102_v6 = vand.u32 1, %v88_v2  ;;  %v109_v10 = vand.u32 1, %v89_v3  ;;  %v116_v11 = vand.u32 1, %v90_v4  ;;  %vm401_vm1 = vcmp.eq.s32.totalorder %v95_v5, 0 }
  0x1a   :  { %v51_v26 = vadd.f32 %v50_v24, %v49_v23  ;;  %v57_v30 = vadd.f32 %v56_v28, %v55_v27  ;;  %v151_v33 = vsel %vm401_vm1, %v48_v22, 0.0  ;;  %v59_v41 = vmul.f32 %v397_v8, %v397_v8 }
  0x1b   :  { %vm427_vm2 = vcmp.eq.s32.totalorder %v102_v6, 0  ;;  %vm431_vm3 = vcmp.eq.s32.totalorder %v109_v10, 0  ;;  %vm435_vm4 = vcmp.eq.s32.totalorder %v116_v11, 0  ;;  %v155_v36 = vsel %vm45_vm0, %v151_v33, 0.0 }
  0x1c   :  { %v152_v34 = vsel %vm427_vm2, %v51_v26, 0.0  ;;  %v153_v35 = vsel %vm431_vm3, %v54_v25, 0.0  ;;  %v154_v38 = vsel %vm435_vm4, %v57_v30, 0.0  ;;  %v60_v44 = vmul.f32 %v399_v9, %v399_v9 }
  0x1d   :  { %v156_v39 = vsel %vm45_vm0, %v152_v34, 0.0  ;;  %v158_v40 = vsel %vm45_vm0, %v153_v35, 0.0  ;;  %v160_v43 = vsel %vm45_vm0, %v154_v38, 0.0  ;;  %v61_v45 = vmul.f32 %v405_v13, %v405_v13 }
  0x1e   :  { %v157_v42 = vadd.f32 %v156_v39, %v155_v36  ;;  %v66_v46 = vcombine.high %v58_v37, %v58_v37  ;;  %v67_v47 = vcombine.high %v59_v41, %v59_v41  ;;  %v74_v48 = vsel %vm45_vm0, %v58_v37, 0.0 }
  0x1f   :  { %v80_v49 = vsel %vm45_vm0, %v59_v41, 0.0  ;;  %v68_v51 = vcombine.high %v60_v44, %v60_v44  ;;  %v69_v52 = vcombine.high %v61_v45, %v61_v45  ;;  %v75_v53 = vsel %vm45_vm0, %v60_v44, 0.0 }
  0x20   :  { %v159_v50 = vadd.f32 %v158_v40, %v157_v42  ;;  %v76_v54 = vadd.f32 %v75_v53, %v74_v48  ;;  %v77_v55 = vsel %vm45_vm0, %v66_v46, 0.0  ;;  %v81_v56 = vsel %vm45_vm0, %v61_v45, 0.0 }
  0x21   :  { %v83_v57 = vsel %vm45_vm0, %v67_v47, 0.0  ;;  %v78_v59 = vsel %vm45_vm0, %v68_v51, 0.0  ;;  %v82_v60 = vadd.f32 %v81_v56, %v80_v49  ;;  %v84_v61 = vsel %vm45_vm0, %v69_v52, 0.0  ;;  %v209_v52 = vld [vmem:[%s531_s2] sm:$0xf] }
  0x22   :  { %v161_v58 = vadd.f32 %v160_v43, %v159_v50  ;;  %v79_v62 = vadd.f32 %v78_v59, %v77_v55  ;;  %v85_v63 = vadd.f32 %v84_v61, %v83_v57  ;;  %v173_v0 = vsel %vm401_vm1, %v76_v54, 0.0  ;;  %v205_v50 = vld [vmem:[%s530_s1] sm:$0xf]  ;;  %s353_s1 = smov [#allocation5]  }
  0x23   :  { %v164_v2 = vsel %vm45_vm0, %v48_v22, 0.0  ;;  %v175_v3 = vsel %vm431_vm3, %v82_v60, 0.0  ;;  %v177_v4 = vsel %vm45_vm0, %v173_v0, 0.0  ;;  %v165_v5 = vsel %vm45_vm0, %v51_v26, 0.0  ;;  %s271_s2 = sshll.u32 %s353_s1, 4  ;;  %s272_s2 = int_to_ptr.vmem [resolvable:$true] %s271_s2 }
  0x24   :  { %162 = vadd.xlane.f32.xlu0 %v161_v58  ;;  %v167_v6 = vsel %vm45_vm0, %v54_v25, 0.0  ;;  %v174_v10 = vsel %vm427_vm2, %v79_v62, 0.0  ;;  %v176_v11 = vsel %vm435_vm4, %v85_v63, 0.0  ;;  %v166_v14 = vadd.f32 %v165_v5, %v164_v2  ;;  %s322_s29 = scalar_lea.vmem %s272_s2, 512  ;;  %p327_p9 = scmp.lt.s32.totalorder %s272_s2, %s272_s2 }
  0x25   :  { %v178_v15 = vsel %vm45_vm0, %v174_v10, 0.0  ;;  %v180_v16 = vsel %vm45_vm0, %v175_v3, 0.0  ;;  %v169_v17 = vsel %vm45_vm0, %v57_v30, 0.0  ;;  %v186_v18 = vsel %vm45_vm0, %v76_v54, 0.0  ;;  %p323_p8 = scmp.ne.s32.totalorder %s272_s2, %s322_s29  ;;  %p328_p10 = scmp.lt.s32.totalorder %s322_s29, %s322_s29 }
  0x26   :  { %v179_v19 = vadd.f32 %v178_v15, %v177_v4  ;;  %v168_v20 = vadd.f32 %v167_v6, %v166_v14  ;;  %v187_v21 = vsel %vm45_vm0, %v79_v62, 0.0  ;;  %v189_v22 = vsel %vm45_vm0, %v82_v60, 0.0 }
  0x27   :  { %v182_v23 = vsel %vm45_vm0, %v176_v11, 0.0  ;;  %v188_v24 = vadd.f32 %v187_v21, %v186_v18  ;;  %v191_v28 = vsel %vm45_vm0, %v85_v63, 0.0  ;;  %v351_v34 = vmov 1   ;;  %p329_p11 = por %p328_p10, %p327_p9 }
  0x28   :  { %v181_v25 = vadd.f32 %v180_v16, %v179_v19  ;;  %v170_v26 = vadd.f32 %v169_v17, %v168_v20  ;;  %290 = vset.pattern.permute.xlu1 %v351_v34  ;;  %v352_v35 = vmov 0   ;;  %vm195_vm5 = vcmp.eq.s32.totalorder %v389_v1, 0 }
  0x29   :  { %v190_v27 = vadd.f32 %v189_v22, %v188_v24  ;;  %289 = vset.pattern.permute.xlu0 %v352_v35  ;;  %p330_p12 = pnand %p329_p11, %p323_p8 }
  0x2a   :  { %v183_v33 = vadd.f32 %v182_v23, %v181_v25  ;;  %171 = vadd.xlane.f32.xlu0 %v170_v26 }
  0x2b   :  { %v192_v30 = vadd.f32 %v191_v28, %v190_v27 }
  0x2c   :  { %184 = vadd.xlane.f32.xlu1 %v183_v33 }
  0x30   :  { %193 = vadd.xlane.f32.xlu1 %v192_v30 }
  0xb1   :  { %v163_v36 = vpop.xlane.xlu0 %162 }
  0xb7   :  { %v172_v37 = vpop.xlane.xlu0 %171 }
  0xb8   :  { %v196_v38 = vsub.f32 %v172_v37, %v163_v36 }
  0xb9   :  { %v185_v39 = vpop.xlane.xlu1 %184 }
  0xba   :  { %v197_v40 = vsel %vm195_vm5, %v163_v36, %v196_v38 }
  0xbb   :  { %v200_v41 = vmul.f32 0.001953125, %v197_v40 }
  0xbd   :  { %v194_v42 = vpop.xlane.xlu1 %193  ;;  %v202_v44 = vmul.f32 %v200_v41, %v200_v41 }
  0xbe   :  { %v198_v43 = vsub.f32 %v194_v42, %v185_v39 }
  0xc0   :  { %v199_v45 = vsel %vm195_vm5, %v185_v39, %v198_v43 }
  0xc1   :  { %v201_v46 = vmul.f32 0.001953125, %v199_v45 }
  0xc3   :  { %v203_v47 = vsub.f32 %v201_v46, %v202_v44 }
  0xc5   :  { %v204_v48 = vmax.f32 %v203_v47, 0.0 }
  0xc7   :  { %v206_v49 = vadd.f32 1e-05, %v204_v48 }
  0xc9   :  { %298 = vrsqrt.f32 %v206_v49 }
  0xd3   :  { %v299_v51 = vpop.eup %298 }
  0xd4   :  { %v208_v1 = vmul.f32 %v299_v51, %v205_v50 }
  0xd6   :  { %218 = vperm.xlu1 %290, %v208_v1   ;;  %214 = vperm.xlu0 %289, %v208_v1   ;;  %v210_v53 = vmul.f32 %v208_v1, %v200_v41 }
  0xd8   :  { %v211_v54 = vsub.f32 %v209_v52, %v210_v53 }
  0xda   :  { %291 = vset.pattern.permute.xlu1 %v352_v35  ;;  %293 = vset.pattern.permute.xlu0 %v351_v34 }
  0xdb   :  { %227 = vperm.xlu1 %291, %v211_v54  }
  0xdf   :  { %292 = vset.pattern.permute.xlu1 %v351_v34 }
  0xe0   :  { %231 = vperm.xlu1 %292, %v211_v54  }
 0x155   :  { %v219_v55 = vpop.permute.xlu1 %218  ;;  %v215_v56 = vpop.permute.xlu0 %214 }
 0x156   :  { %v221_v57 = vsel %vm401_vm1, %v215_v56, %v219_v55  ;;  %v222_v58 = vsel %vm427_vm2, %v215_v56, %v219_v55  ;;  %v223_v59 = vsel %vm431_vm3, %v215_v56, %v219_v55  ;;  %v224_v60 = vsel %vm435_vm4, %v215_v56, %v219_v55 }
 0x157   :  { %v242_v62 = vcombine.low %v221_v57, %v222_v58  ;;  %v243_v63 = vcombine.low %v223_v59, %v224_v60 }
 0x159   :  { %v246_v0 = vmul.f32 %v242_v62, %v395_v7  ;;  %v247_v2 = vmul.f32 %v243_v63, %v397_v8  ;;  %v248_v11 = vmul.f32 %v242_v62, %v399_v9  ;;  %v249_v7 = vmul.f32 %v243_v63, %v405_v13 }
 0x15a   :  { %v228_v61 = vpop.permute.xlu1 %227 }
 0x15f   :  { %v232_v3 = vpop.permute.xlu1 %231 }
 0x160   :  { %v234_v4 = vsel %vm401_vm1, %v228_v61, %v232_v3  ;;  %v235_v5 = vsel %vm427_vm2, %v228_v61, %v232_v3  ;;  %v236_v6 = vsel %vm431_vm3, %v228_v61, %v232_v3  ;;  %v237_v10 = vsel %vm435_vm4, %v228_v61, %v232_v3 }
 0x161   :  { %v254_v8 = vcombine.low %v234_v4, %v235_v5  ;;  %v255_v14 = vcombine.low %v236_v6, %v237_v10 }
 0x163   :  { %v258_v15 = vadd.f32 %v254_v8, %v246_v0  ;;  %v259_v12 = vadd.f32 %v255_v14, %v247_v2  ;;  %v260_v16 = vadd.f32 %v254_v8, %v248_v11  ;;  %v261_v17 = vadd.f32 %v255_v14, %v249_v7 }
 0x165   :  { %262 = vst [vmem:[#allocation5] sm:$0xff] %v258_v15  ;;  %263 = vst [vmem:[#allocation5 + $0x8] sm:$0xff] %v259_v12 }
 0x166   :  { %264 = vst [vmem:[#allocation5 + $0x10] sm:$0xff] %v260_v16  ;;  %265 = vst [vmem:[#allocation5 + $0x18] sm:$0xff] %v261_v17 }
 0x167   :  { %333 = shalt.err (!%p330_p12)
}
 0x168   :  { %s334_s5 = scalar_lea.hbm %s532_s3, 512 }
 0x169   :  { %p335_p13 = scmp.ne.s32.totalorder %s532_s3, %s334_s5  ;;  %p338_p0 = scmp.lt.u32.totalorder %s334_s5, %s532_s3 }
 0x16b   :  { %p340_p1 = pnand %p338_p0, %p335_p13 }
 0x16d   :  { %343 = shalt.err (!%p340_p1)
}
 0x16e   :  { %277 = dma.vmem_to_hbm [thread:$0]  %s272_s2, 512, %s532_s3, [#allocation4], %s349_s22, %s349_s22, %s350_s23  }
 0x16f   :  { %346 = dma.done.wait [#allocation4], 512  }
 0x170   :  { %347 = vsyncadd [#allocation4], 4294966784 }
 0x171   :  { %281 = vsyncpa [#allocation3], 1 }
 0x172   :  { %282 = vsyncpa [#allocation4], 1 }

</bundles_post_ra>
